<compile_context>
chip_gen: v5e
topology: v5e:2x2
jax: 0.10.0
libtpu: 0.0.40
codegen_flags: <defaults>
</compile_context>

<pallas_src>
import functools
import math

import jax
import jax.numpy as jnp
import numpy as np
from jax import lax
from jax.experimental import pallas as pl
from jax.experimental.pallas import tpu as pltpu


def _sinusoidal_table(n_pos: int, dim: int) -> jnp.ndarray:
    """Standard [sin | cos] sinusoidal positional table, shape (n_pos, dim)."""
    positions = jnp.arange(n_pos, dtype=jnp.float32)[:, None]          # (N,1)
    half = dim // 2
    freqs = jnp.exp(-math.log(10000.0)
                    * jnp.arange(half, dtype=jnp.float32) / float(half))
    args = positions * freqs[None, :]                                  # (N,half)
    return jnp.concatenate([jnp.sin(args), jnp.cos(args)], axis=-1)    # (N,dim)


def _mol3d_kernel(atom_ref, coord_ref, mask_ref, pos_ref,
                  e1_ref, wc1_ref, bf_ref, w2_ref, b2_ref,
                  mol_ref, feat_ref):
    R = atom_ref.shape[0]            # tb * N rows per grid step
    Kp = e1_ref.shape[0]             # padded vocab (multiple of 128)
    TB, N, D = feat_ref.shape

    # ---- fused embedding-gather + Linear1: lane-dense (R,Kp)@(Kp,H) bf16 ----
    ids = atom_ref[...]                                          # (R, 1) int32
    one_hot = (lax.broadcasted_iota(jnp.int32, (R, Kp), 1) == ids
               ).astype(jnp.bfloat16)                            # (R, Kp)
    h = jnp.dot(one_hot, e1_ref[...],
                preferred_element_type=jnp.float32)              # (R, H) f32

    # ---- fused coordinate projection: small K=3 matmul on the MXU ----
    h = h + jnp.dot(coord_ref[...].astype(jnp.bfloat16), wc1_ref[...],
                    preferred_element_type=jnp.float32)          # (R, H)
    h = h + bf_ref[...]                                          # fused bias

    # ---- ReLU + second Linear of the MLP (bf16 MXU, f32 accumulate) ----
    h = jnp.maximum(h, 0.0).astype(jnp.bfloat16)
    feats = (jnp.dot(h, w2_ref[...], preferred_element_type=jnp.float32)
             + b2_ref[...])                                      # (R, D) f32

    # ---- positional embedding add + per-atom feature store ----
    feats = feats.reshape(TB, N, D) + pos_ref[...]               # (TB, N, D)
    feat_ref[...] = feats.astype(feat_ref.dtype)

    # ---- masked mean pooling (EUP approx reciprocal, eps kept) ----
    m = mask_ref[...].reshape(TB, N, 1)                          # (TB, N, 1)
    denom = jnp.sum(m, axis=1) + 1e-5                            # (TB, 1)
    pooled = jnp.sum(feats * m, axis=1)                          # (TB, D)
    mol_ref[...] = (pooled * pl.reciprocal(denom, approx=True)
                    ).astype(mol_ref.dtype)


def molecular_3d_encoder(atom_vec, coordinates, atoms_mask, params, *,
                         tb=None, feat_dtype=jnp.float32):
    """Pallas implementation of Molecular3DEncoder.forward.

    atom_vec:    (B, N) int
    coordinates: (B, N, 3) float
    atoms_mask:  (B, N) bool
    feat_dtype:  dtype of per-atom features output (use jnp.bfloat16 to halve
                 the dominant HBM writeback if downstream consumers allow).
    returns (molecular_embedding (B, D), per_atom_features (B, N, D))
    """
    B, N = atom_vec.shape
    V, Ea = params["emb"].shape
    H = params["w1"].shape[1]
    D = params["w2"].shape[1]

    # ---- fold embedding table + coord projection into the first MLP layer ----
    #   E1  = pad(emb @ W1[:Ea], Kp)   (Kp, H)  lane/sublane-aligned, bf16
    #   Wc1 = wc  @ W1[Ea:]            (3, H)   bf16
    #   b_f = bc  @ W1[Ea:] + b1       (1, H)   f32
    w1a = params["w1"][:Ea]
    w1c = params["w1"][Ea:]
    Kp = max(128, ((V + 127) // 128) * 128)
    e1 = jnp.pad((params["emb"] @ w1a).astype(jnp.float32),
                 ((0, Kp - V), (0, 0))).astype(jnp.bfloat16)     # (Kp, H)
    wc1 = (params["wc"] @ w1c).astype(jnp.bfloat16)              # (3, H)
    bf = (params["bc"] @ w1c + params["b1"]).reshape(1, H).astype(jnp.float32)
    w2 = params["w2"].astype(jnp.bfloat16)                       # (H, D)
    b2 = params["b2"].reshape(1, D).astype(jnp.float32)          # (1, D)
    pos_tab = _sinusoidal_table(N, D).astype(jnp.float32)        # (N, D)

    # ---- batch tiling: TB molecules per grid step ----
    # Keep grid even / >= 2 for v7x's two TensorCores when batch allows, and
    # scale tb up for large batches (amortizes ~0.35us/step; M multiple of 256
    # fills the v6e/v7x MXU). VMEM is nowhere near binding at these shapes.
    if tb is None:
        tb = B if B < 16 else min(256, max(8, B // 2))
    tb = max(1, min(tb, B))
    bp = -(-B // tb) * tb
    pad = bp - B

    ids = atom_vec.astype(jnp.int32)
    mask = atoms_mask.astype(jnp.float32)
    coords = coordinates.astype(jnp.float32)
    if pad:
        ids = jnp.pad(ids, ((0, pad), (0, 0)))
        mask = jnp.pad(mask, ((0, pad), (0, 0)))
        coords = jnp.pad(coords, ((0, pad), (0, 0), (0, 0)))

    # Flatten per-atom inputs so the kernel never moves lane data to sublanes.
    ids_col = ids.reshape(bp * N, 1)
    mask_col = mask.reshape(bp * N, 1)
    coords_flat = coords.reshape(bp * N, 3)

    R = tb * N
    grid_spec = pltpu.PrefetchScalarGridSpec(
        num_scalar_prefetch=0,
        grid=(bp // tb,),
        in_specs=[
            pl.BlockSpec((R, 1), lambda i: (i, 0)),              # atom ids
            pl.BlockSpec((R, 3), lambda i: (i, 0)),              # coordinates
            pl.BlockSpec((R, 1), lambda i: (i, 0)),              # mask
            pl.BlockSpec((N, D), lambda i: (0, 0)),              # pos-emb table
            pl.BlockSpec((Kp, H), lambda i: (0, 0)),             # fused emb (bf16)
            pl.BlockSpec((3, H), lambda i: (0, 0)),              # fused coord W (bf16)
            pl.BlockSpec((1, H), lambda i: (0, 0)),              # fused bias (f32)
            pl.BlockSpec((H, D), lambda i: (0, 0)),              # MLP W2 (bf16)
            pl.BlockSpec((1, D), lambda i: (0, 0)),              # MLP b2 (f32)
        ],
        out_specs=[
            pl.BlockSpec((tb, D), lambda i: (i, 0)),             # molecular emb
            pl.BlockSpec((tb, N, D), lambda i: (i, 0, 0)),       # per-atom feats
        ],
    )

    mol, feats = pl.pallas_call(
        _mol3d_kernel,
        out_shape=(jax.ShapeDtypeStruct((bp, D), jnp.float32),
                   jax.ShapeDtypeStruct((bp, N, D), feat_dtype)),
        grid_spec=grid_spec,
        compiler_params=pltpu.CompilerParams(
            dimension_semantics=("parallel",)),                  # 2 TCs on v7x
    )(ids_col, coords_flat, mask_col, pos_tab, e1, wc1, bf, w2, b2)

    return mol[:B], feats[:B]


def _reference(atom_vec, coordinates, atoms_mask, params):
    """Pure-JAX reference of the PyTorch forward (unfused, f32)."""
    N = atom_vec.shape[1]
    D = params["w2"].shape[1]
    atom_e = params["emb"][atom_vec]                             # (B,N,Ea)
    coord_e = coordinates.astype(jnp.float32) @ params["wc"] + params["bc"]
    comb = jnp.concatenate([atom_e, coord_e], axis=-1)
    h = jnp.maximum(comb @ params["w1"] + params["b1"], 0.0)
    feats = h @ params["w2"] + params["b2"]
    feats = feats + _sinusoidal_table(N, D)[None]
    mf = feats * atoms_mask[..., None].astype(jnp.float32)
    mol = mf.sum(axis=1) / (atoms_mask.sum(axis=1, keepdims=True)
                            .astype(jnp.float32) + 1e-05)
    return mol, feats


def _init_params(key, V, Ea, Ec, H, D):
    ks = jax.random.split(key, 8)
    s = 0.1
    return {
        "emb": s * jax.random.normal(ks[0], (V, Ea), jnp.float32),
        "wc":  s * jax.random.normal(ks[1], (3, Ec), jnp.float32),
        "bc":  s * jax.random.normal(ks[2], (Ec,), jnp.float32),
        "w1":  s * jax.random.normal(ks[3], (Ea + Ec, H), jnp.float32),
        "b1":  s * jax.random.normal(ks[4], (H,), jnp.float32),
        "w2":  s * jax.random.normal(ks[5], (H, D), jnp.float32),
        "b2":  s * jax.random.normal(ks[6], (D,), jnp.float32),
    }


if __name__ == "__main__":
    # Small config consistent with the module:
    #   num_atom_types=16, mol_atom_embedding_dim=32, mol_coord_embedding_dim=32,
    #   mol_3d_encoder_output_dim=128, max_atoms=16, batch=16.
    # tb=8 -> grid=2 (both v7x TensorCores get a step); M = tb*N = 128 rows.
    B, N, V = 16, 16, 16
    Ea, Ec, D = 32, 32, 128
    H = (Ea + Ec) * 2  # combined_atom_feat_dim * 2 = 128 (lane-dense)

    key = jax.random.PRNGKey(0)
    k_ids, k_xyz, k_msk, k_par = jax.random.split(key, 4)

    atom_vec = jax.random.randint(k_ids, (B, N), 0, V, dtype=jnp.int32)
    coordinates = jax.random.normal(k_xyz, (B, N, 3), jnp.float32)
    atoms_mask = jax.random.uniform(k_msk, (B, N)) > 0.3

    params = _init_params(k_par, V, Ea, Ec, H, D)

    # jit the wrapper so the folded-weight precompute + sin/cos table are
    # compiled/cached with the kernel rather than re-run eagerly every call.
    encoder = jax.jit(functools.partial(molecular_3d_encoder, tb=8))
    mol_emb, per_atom = encoder(atom_vec, coordinates, atoms_mask, params)
    jax.block_until_ready((mol_emb, per_atom))

    mol_ref, feat_ref = _reference(atom_vec, coordinates, atoms_mask, params)
    np.testing.assert_allclose(np.asarray(per_atom), np.asarray(feat_ref),
                               rtol=1e-2, atol=1e-2)
    np.testing.assert_allclose(np.asarray(mol_emb), np.asarray(mol_ref),
                               rtol=1e-2, atol=1e-2)

    assert mol_emb.shape == (B, D) and per_atom.shape == (B, N, D)
    print("KERNEL_OK")
</pallas_src>

<mosaic_0001>
module attributes {stable_mosaic.version = 11 : i64} {
  func.func @_mol3d_kernel(%arg0: i32, %arg1: memref<128x1xi32, #tpu.memory_space<vmem>>, %arg2: memref<128x3xf32, #tpu.memory_space<vmem>>, %arg3: memref<128x1xf32, #tpu.memory_space<vmem>>, %arg4: memref<16x128xf32, #tpu.memory_space<vmem>>, %arg5: memref<128x128xbf16, #tpu.memory_space<vmem>>, %arg6: memref<3x128xbf16, #tpu.memory_space<vmem>>, %arg7: memref<1x128xf32, #tpu.memory_space<vmem>>, %arg8: memref<128x128xbf16, #tpu.memory_space<vmem>>, %arg9: memref<1x128xf32, #tpu.memory_space<vmem>>, %arg10: memref<8x128xf32, #tpu.memory_space<vmem>>, %arg11: memref<8x16x128xf32, #tpu.memory_space<vmem>>) attributes {dimension_semantics = [#tpu.dimension_semantics<parallel>], iteration_bounds = array<i64: 2>, scalar_prefetch = 0 : i64, scratch_operands = 0 : i64, tpu.core_type = #tpu.core_type<tc>, window_params = [{transform_indices = @transform_0, window_bounds = array<i64: 128, 1>}, {transform_indices = @transform_1, window_bounds = array<i64: 128, 3>}, {transform_indices = @transform_2, window_bounds = array<i64: 128, 1>}, {pipeline_mode = #tpu.pipeline_mode<synchronous>, transform_indices = @transform_3, window_bounds = array<i64: 16, 128>}, {pipeline_mode = #tpu.pipeline_mode<synchronous>, transform_indices = @transform_4, window_bounds = array<i64: 128, 128>}, {pipeline_mode = #tpu.pipeline_mode<synchronous>, transform_indices = @transform_5, window_bounds = array<i64: 3, 128>}, {pipeline_mode = #tpu.pipeline_mode<synchronous>, transform_indices = @transform_6, window_bounds = array<i64: 1, 128>}, {pipeline_mode = #tpu.pipeline_mode<synchronous>, transform_indices = @transform_7, window_bounds = array<i64: 128, 128>}, {pipeline_mode = #tpu.pipeline_mode<synchronous>, transform_indices = @transform_8, window_bounds = array<i64: 1, 128>}, {transform_indices = @transform_9, window_bounds = array<i64: 8, 128>}, {transform_indices = @transform_10, window_bounds = array<i64: 8, 16, 128>}]} {
    %c0 = arith.constant 0 : index
    %c0_0 = arith.constant 0 : index
    %0 = vector.load %arg1[%c0, %c0_0] : memref<128x1xi32, #tpu.memory_space<vmem>>, vector<128x1xi32>
    %1 = tpu.iota {dimensions = array<i32: 1>} : vector<128x128xi32>
    %2 = vector.broadcast %0 : vector<128x1xi32> to vector<128x128xi32>
    %3 = arith.cmpi eq, %1, %2 : vector<128x128xi32>
    %4 = arith.extui %3 : vector<128x128xi1> to vector<128x128xi32>
    %5 = arith.sitofp %4 : vector<128x128xi32> to vector<128x128xf32>
    %6 = arith.truncf %5 : vector<128x128xf32> to vector<128x128xbf16>
    %c0_1 = arith.constant 0 : index
    %c0_2 = arith.constant 0 : index
    %7 = vector.load %arg5[%c0_1, %c0_2] : memref<128x128xbf16, #tpu.memory_space<vmem>>, vector<128x128xbf16>
    %cst = arith.constant dense<0.000000e+00> : vector<128x128xf32>
    %8 = tpu.matmul %6, %7, %cst {dimension_numbers = #tpu.dot_dimension_numbers<[1], [0], [0], [1], [0, 0, 1, 1], [], []>} : vector<128x128xbf16>, vector<128x128xbf16>, vector<128x128xf32> -> vector<128x128xf32>
    %c0_3 = arith.constant 0 : index
    %c0_4 = arith.constant 0 : index
    %9 = vector.load %arg2[%c0_3, %c0_4] : memref<128x3xf32, #tpu.memory_space<vmem>>, vector<128x3xf32>
    %10 = arith.truncf %9 : vector<128x3xf32> to vector<128x3xbf16>
    %c0_5 = arith.constant 0 : index
    %c0_6 = arith.constant 0 : index
    %11 = vector.load %arg6[%c0_5, %c0_6] : memref<3x128xbf16, #tpu.memory_space<vmem>>, vector<3x128xbf16>
    %cst_7 = arith.constant dense<0.000000e+00> : vector<128x128xf32>
    %12 = tpu.matmul %10, %11, %cst_7 {dimension_numbers = #tpu.dot_dimension_numbers<[1], [0], [0], [1], [0, 0, 1, 1], [], []>} : vector<128x3xbf16>, vector<3x128xbf16>, vector<128x128xf32> -> vector<128x128xf32>
    %13 = arith.addf %8, %12 : vector<128x128xf32>
    %c0_8 = arith.constant 0 : index
    %c0_9 = arith.constant 0 : index
    %14 = vector.load %arg7[%c0_8, %c0_9] : memref<1x128xf32, #tpu.memory_space<vmem>>, vector<1x128xf32>
    %15 = vector.broadcast %14 : vector<1x128xf32> to vector<128x128xf32>
    %16 = arith.addf %13, %15 : vector<128x128xf32>
    %cst_10 = arith.constant 0.000000e+00 : f32
    %17 = vector.broadcast %cst_10 : f32 to vector<128x128xf32>
    %18 = arith.maximumf %16, %17 : vector<128x128xf32>
    %19 = arith.truncf %18 : vector<128x128xf32> to vector<128x128xbf16>
    %c0_11 = arith.constant 0 : index
    %c0_12 = arith.constant 0 : index
    %20 = vector.load %arg8[%c0_11, %c0_12] : memref<128x128xbf16, #tpu.memory_space<vmem>>, vector<128x128xbf16>
    %cst_13 = arith.constant dense<0.000000e+00> : vector<128x128xf32>
    %21 = tpu.matmul %19, %20, %cst_13 {dimension_numbers = #tpu.dot_dimension_numbers<[1], [0], [0], [1], [0, 0, 1, 1], [], []>} : vector<128x128xbf16>, vector<128x128xbf16>, vector<128x128xf32> -> vector<128x128xf32>
    %c0_14 = arith.constant 0 : index
    %c0_15 = arith.constant 0 : index
    %22 = vector.load %arg9[%c0_14, %c0_15] : memref<1x128xf32, #tpu.memory_space<vmem>>, vector<1x128xf32>
    %23 = vector.broadcast %22 : vector<1x128xf32> to vector<128x128xf32>
    %24 = arith.addf %21, %23 : vector<128x128xf32>
    %25 = vector.shape_cast %24 : vector<128x128xf32> to vector<8x16x128xf32>
    %c0_16 = arith.constant 0 : index
    %c0_17 = arith.constant 0 : index
    %26 = vector.load %arg4[%c0_16, %c0_17] : memref<16x128xf32, #tpu.memory_space<vmem>>, vector<16x128xf32>
    %27 = vector.shape_cast %26 : vector<16x128xf32> to vector<1x16x128xf32>
    %28 = vector.broadcast %27 : vector<1x16x128xf32> to vector<8x16x128xf32>
    %29 = arith.addf %25, %28 : vector<8x16x128xf32>
    %c0_18 = arith.constant 0 : index
    %c0_19 = arith.constant 0 : index
    %c0_20 = arith.constant 0 : index
    %30 = vector.load %arg11[%c0_18, %c0_19, %c0_20] : memref<8x16x128xf32, #tpu.memory_space<vmem>>, vector<8x16x128xf32>
    tpu.vector_store %arg11[%c0_18, %c0_19, %c0_20], %29 {strides = array<i32>} : memref<8x16x128xf32, #tpu.memory_space<vmem>>, vector<8x16x128xf32>,
    %c0_21 = arith.constant 0 : index
    %c0_22 = arith.constant 0 : index
    %31 = vector.load %arg3[%c0_21, %c0_22] : memref<128x1xf32, #tpu.memory_space<vmem>>, vector<128x1xf32>
    %32 = vector.shape_cast %31 : vector<128x1xf32> to vector<8x16x1xf32>
    %cst_23 = arith.constant dense<0.000000e+00> : vector<8x1xf32>
    %33 = vector.multi_reduction <add>, %32, %cst_23 [1] : vector<8x16x1xf32> to vector<8x1xf32>
    %cst_24 = arith.constant 9.99999974E-6 : f32
    %34 = vector.broadcast %cst_24 : f32 to vector<8x1xf32>
    %35 = arith.addf %33, %34 : vector<8x1xf32>
    %36 = vector.broadcast %32 : vector<8x16x1xf32> to vector<8x16x128xf32>
    %37 = arith.mulf %29, %36 : vector<8x16x128xf32>
    %cst_25 = arith.constant dense<0.000000e+00> : vector<8x128xf32>
    %38 = vector.multi_reduction <add>, %37, %cst_25 [1] : vector<8x16x128xf32> to vector<8x128xf32>
    %39 = tpu.reciprocal %35 {approx = true} : vector<8x1xf32> -> vector<8x1xf32>
    %40 = vector.broadcast %39 : vector<8x1xf32> to vector<8x128xf32>
    %41 = arith.mulf %38, %40 : vector<8x128xf32>
    %c0_26 = arith.constant 0 : index
    %c0_27 = arith.constant 0 : index
    %42 = vector.load %arg10[%c0_26, %c0_27] : memref<8x128xf32, #tpu.memory_space<vmem>>, vector<8x128xf32>
    tpu.vector_store %arg10[%c0_26, %c0_27], %41 {strides = array<i32>} : memref<8x128xf32, #tpu.memory_space<vmem>>, vector<8x128xf32>,
    return
  }
  func.func @transform_0(%arg0: i32) -> (i32, i32) {
    %c0_i32 = arith.constant 0 : i32
    %c0_i32_0 = arith.constant 0 : i32
    return %arg0, %c0_i32 : i32, i32
  }
  func.func @transform_1(%arg0: i32) -> (i32, i32) {
    %c0_i32 = arith.constant 0 : i32
    %c0_i32_0 = arith.constant 0 : i32
    return %arg0, %c0_i32 : i32, i32
  }
  func.func @transform_2(%arg0: i32) -> (i32, i32) {
    %c0_i32 = arith.constant 0 : i32
    %c0_i32_0 = arith.constant 0 : i32
    return %arg0, %c0_i32 : i32, i32
  }
  func.func @transform_3(%arg0: i32) -> (i32, i32) {
    %c0_i32 = arith.constant 0 : i32
    %c0_i32_0 = arith.constant 0 : i32
    %c0_i32_1 = arith.constant 0 : i32
    return %c0_i32, %c0_i32_0 : i32, i32
  }
  func.func @transform_4(%arg0: i32) -> (i32, i32) {
    %c0_i32 = arith.constant 0 : i32
    %c0_i32_0 = arith.constant 0 : i32
    %c0_i32_1 = arith.constant 0 : i32
    return %c0_i32, %c0_i32_0 : i32, i32
  }
  func.func @transform_5(%arg0: i32) -> (i32, i32) {
    %c0_i32 = arith.constant 0 : i32
    %c0_i32_0 = arith.constant 0 : i32
    %c0_i32_1 = arith.constant 0 : i32
    return %c0_i32, %c0_i32_0 : i32, i32
  }
  func.func @transform_6(%arg0: i32) -> (i32, i32) {
    %c0_i32 = arith.constant 0 : i32
    %c0_i32_0 = arith.constant 0 : i32
    %c0_i32_1 = arith.constant 0 : i32
    return %c0_i32, %c0_i32_0 : i32, i32
  }
  func.func @transform_7(%arg0: i32) -> (i32, i32) {
    %c0_i32 = arith.constant 0 : i32
    %c0_i32_0 = arith.constant 0 : i32
    %c0_i32_1 = arith.constant 0 : i32
    return %c0_i32, %c0_i32_0 : i32, i32
  }
  func.func @transform_8(%arg0: i32) -> (i32, i32) {
    %c0_i32 = arith.constant 0 : i32
    %c0_i32_0 = arith.constant 0 : i32
    %c0_i32_1 = arith.constant 0 : i32
    return %c0_i32, %c0_i32_0 : i32, i32
  }
  func.func @transform_9(%arg0: i32) -> (i32, i32) {
    %c0_i32 = arith.constant 0 : i32
    %c0_i32_0 = arith.constant 0 : i32
    return %arg0, %c0_i32 : i32, i32
  }
  func.func @transform_10(%arg0: i32) -> (i32, i32, i32) {
    %c0_i32 = arith.constant 0 : i32
    %c0_i32_0 = arith.constant 0 : i32
    %c0_i32_1 = arith.constant 0 : i32
    return %arg0, %c0_i32, %c0_i32_0 : i32, i32, i32
  }
}

</mosaic_0001>

<bundles_post_ra>
// kernel: molecular_3d_encoder.1
= control target key start
LH: loop header
LB: loop body
LE: loop exit
PB: predicated region body
PF: predicated region fallthrough
CT: control target
= control target key end

     0   :  { %s2257_s0 = inlined_call_operand.vmem [shape: s32[256,1], index: 0, kind: input, shape index: {}]   ;;  %s2258_s1 = inlined_call_operand.vmem [shape: f32[256,3], index: 1, kind: input, shape index: {}]   ;;  %s2259_s2 = inlined_call_operand.vmem [shape: f32[256,1], index: 2, kind: input, shape index: {}]   ;;  %s2260_s3 = inlined_call_operand.vmem [shape: f32[16,128], index: 3, kind: input, shape index: {}]   ;;  %s2261_s4 = inlined_call_operand.vmem [shape: bf16[128,128], index: 4, kind: input, shape index: {}]   ;;  %s2262_s5 = inlined_call_operand.vmem [shape: bf16[3,128], index: 5, kind: input, shape index: {}]   ;;  %s2263_s6 = inlined_call_operand.vmem [shape: f32[1,128], index: 6, kind: input, shape index: {}]   ;;  %s2264_s7 = inlined_call_operand.vmem [shape: bf16[128,128], index: 7, kind: input, shape index: {}]   ;;  %s2265_s8 = inlined_call_operand.vmem [shape: f32[1,128], index: 8, kind: input, shape index: {}]   ;;  %s2266_s9 = inlined_call_operand.hbm [shape: f32[16,128], index: 9, kind: output, shape index: {0}]   ;;  %s2267_s10 = inlined_call_operand.hbm [shape: f32[16,16,128], index: 10, kind: output, shape index: {1}]  }
   0x1   :  { %2268 = sst [smem:[#allocation8_spill]] %s2257_s0 }
   0x2   :  { %2269 = sst [smem:[#allocation9_spill]] %s2258_s1 }
   0x3   :  { %16 = vsyncpa [#allocation3], 0 }
   0x4   :  { %18 = vsyncpa [#allocation3 + $0x1], 0 }
   0x5   :  { %19 = vsyncpa [#allocation5], 0 }
   0x6   :  { %21 = vsyncpa [#allocation5 + $0x1], 0  ;;  %s1821_s13 = smov 0   ;;  %s1823_s14 = smov 0  }
   0x7   :  { %s1825_s15 = smov 0   ;;  %s1827_s16 = smov 0  }
   0x8 LB: > { %s1842_s17 = sadd.s32 4294967295, %s1759_s16   ;;  %s1437_s18 = sadd.s32 4294967294, %s1759_s16   ;;  %s1759_s16 = sphi %s1827_s16, %s2277_s16   ;;  %s1755_s15 = sphi %s1825_s15, %s2276_s15   ;;  %s1751_s14 = sphi %s1823_s14, %s2275_s14   ;;  %s1747_s13 = sphi %s1821_s13, %s2274_s13  }
   0x9   : > { %s1846_s19 = sadd.s32 1, %s1759_s16   ;;  %s238_s20 = sadd.s32 1, %s1755_s15 }
   0xa   : > { %s235_s21 = ssub.s32 %s1759_s16, %s1846_s19  ;;  %p248_p0 = scmp.ne.s32.totalorder %s1755_s15, %s1751_s14 }
   0xb   : > { %p236_p1 = scmp.eq.s32.totalorder %s235_s21, 0  ;;  %p249_p2 = scmp.eq.s32.totalorder %s1842_s17, 1 }
   0xc   : > { %p254_p3 = scmp.ne.s32.totalorder %s1751_s14, %s1747_s13  ;;  %p255_p4 = scmp.eq.s32.totalorder %s1437_s18, 1 }
   0xd   : > { %s1857_s22 = scalar_select %p236_p1, %s1755_s15, %s238_s20  }
   0xe   : > { %p1859_p5 = por %p249_p2, %p248_p0  ;;  %p1863_p6 = por %p255_p4, %p254_p3 }
   0xf   : > { %p1440_p7 = scmp.ge.s32.totalorder %s1759_s16, 1  ;;  %p344_p8 = scmp.lt.s32.totalorder %s1759_s16, 3 }
  0x11   : > { %p345_p9 = pnand %p1440_p7, %p344_p8 }
  0x12   : > { %s1443_s25 = sshll.u32 (!%p345_p9), %s1842_s17, 4  ;;  %s2272_s0 = sld [smem:[#allocation8_spill]] (!%p345_p9) }
  0x13   : > { %348 = sbr.rel (%p345_p9) target bundleno = 544 (0x220), region = 56  ;;  %p398_p10 = scmp.lt.s32.totalorder (!%p345_p9), %s1443_s25, 31 }
  0x14   : > { %s2273_s1 = sld [smem:[#allocation9_spill]] (!%p345_p9)  ;;  %s1685_s30 = scalar_lea.hbm (!%p345_p9), %s2267_s10, 256 }
  0x18   : > { %v1761_v0 = vmov 0   ;;  %s2279_s25 = smov (!%p398_p10, %s1443_s25), 31  ;;  %v579_v7 = vld [vmem:[%s2262_s5] sm:$0x3]  ;;  %vm605_vm0 = vcmask 1040384   ;;  %vm606_vm1 = vcmask 1041408  }
  0x19   : > { %1646 = vset.pattern.permute.xlu2 %v1761_v0  ;;  %1645 = vset.pattern.permute.xlu1 %v1761_v0  ;;  %s1870_s26 = sshll.u32 %s2279_s25, 3  ;;  %v1762_v8 = vmov 65535   ;;  %vm580_vm2 = vcmask 23552   ;;  %vm969_vm3 = vcmask 7168  }
  0x1a   : > { %1644 = vset.pattern.permute.xlu0 %v1761_v0  ;;  %s1876_s29 = scalar_lea.vmem %s2272_s0, %s1870_s26  ;;  %v607_v9 = vsel %vm605_vm0, 4294967295, %v1762_v8  ;;  %s1894_s20 = scalar_lea.vmem %s2273_s1, %s1870_s26 }
  0x1b   : > { %v421_v1 = vld [vmem:[%s1876_s29 + $0x20] sm:$0xff]  ;;  %v419_v2 = vld [vmem:[%s1876_s29 + $0x10] sm:$0xff]  ;;  %v422_v4 = vld [vmem:[%s1876_s29 + $0x28] sm:$0xff]  ;;  %v608_v10 = vsel %vm606_vm1, %v607_v9, 0  ;;  %s1909_s27 = scalar_lea.vmem %s2259_s2, %s1870_s26  ;;  %s1578_s26 = sshll.u32 %s1842_s17, 7 }
  0x1c   : > { %v417_v3 = vld [vmem:[%s1876_s29] sm:$0xff]  ;;  %448 = vperm.xlu2 %1646, %v421_v1   ;;  %442 = vperm.xlu1 %1645, %v419_v2   ;;  %v420_v5 = vld [vmem:[%s1876_s29 + $0x18] sm:$0xff]  ;;  %v418_v6 = vld [vmem:[%s1876_s29 + $0x8] sm:$0xff]  ;;  %v610_v11 = vand.u32 %v608_v10, %v579_v7  ;;  %s1314_s11 = scalar_lea.hbm %s2267_s10, %s1578_s26 }
  0x1d   : > { %436 = vperm.xlu0 %1644, %v417_v3   ;;  %v429_v12 = vld [vmem:[%s1876_s29 + $0x60] sm:$0xff]  ;;  %v424_v13 = vld [vmem:[%s1876_s29 + $0x38] sm:$0xff]  ;;  %v423_v14 = vld [vmem:[%s1876_s29 + $0x30] sm:$0xff] }
  0x1e   : > { %619 = vmatpush.bf16.msra.mxu0 %v610_v11  ;;  %v555_v15 = vld [vmem:[%s1894_s20] sm:$0xff]  ;;  %v556_v16 = vld [vmem:[%s1894_s20 + $0x8] sm:$0xff]  ;;  %v427_v21 = vld [vmem:[%s1876_s29 + $0x50] sm:$0xff] }
  0x1f   : > { %v571_v17 = vpack.c.bf16 %v556_v16, %v555_v15  ;;  %v426_v18 = vld [vmem:[%s1876_s29 + $0x48] sm:$0xff]  ;;  %v425_v19 = vld [vmem:[%s1876_s29 + $0x40] sm:$0xff]  ;;  %v432_v22 = vld [vmem:[%s1876_s29 + $0x78] sm:$0xff] }
  0x20   : > { %v430_v20 = vld [vmem:[%s1876_s29 + $0x68] sm:$0xff]  ;;  %v431_v23 = vld [vmem:[%s1876_s29 + $0x70] sm:$0xff]  ;;  %v558_v25 = vld [vmem:[%s1894_s20 + $0x18] sm:$0xff] }
  0x21   : > { %1465 = vmatmul.msk.bf16.vlgmr.msra.gmra.mxu0 %vm580_vm2, %v571_v17  ;;  %v557_v24 = vld [vmem:[%s1894_s20 + $0x10] sm:$0xff]  ;;  %v954_v26 = vld [vmem:[%s1909_s27 + $0x8] sm:$0xff]  ;;  %v953_v27 = vld [vmem:[%s1909_s27] sm:$0xff] }
  0x22   : > { %v572_v28 = vpack.c.bf16 %v558_v25, %v557_v24  ;;  %v971_v29 = vsel %vm969_vm3, %v954_v26, 0.0  ;;  %v970_v30 = vsel %vm969_vm3, %v953_v27, 0.0  ;;  %v428_v31 = vld [vmem:[%s1876_s29 + $0x58] sm:$0xff]  ;;  %v959_v34 = vld [vmem:[%s1909_s27 + $0x30] sm:$0xff]  ;;  %v957_v36 = vld [vmem:[%s1909_s27 + $0x20] sm:$0xff]  ;;  %s2105_s29 = sand.u32 1, %s1751_s14  }
  0x23   : > { %v972_v32 = vadd.f32 %v971_v29, %v970_v30  ;;  %v960_v33 = vld [vmem:[%s1909_s27 + $0x38] sm:$0xff]  ;;  %v997_v38 = vsel %vm969_vm3, %v959_v34, 0.0  ;;  %v958_v39 = vld [vmem:[%s1909_s27 + $0x28] sm:$0xff]  ;;  %v988_v40 = vsel %vm969_vm3, %v957_v36, 0.0  ;;  %v955_v42 = vld [vmem:[%s1909_s27 + $0x10] sm:$0xff]  ;;  %s1442_s12 = sshll.u32 %s2105_s29, 7 }
  0x24   : > { %451 = vperm.xlu2 %1646, %v422_v4   ;;  %445 = vperm.xlu1 %1645, %v420_v5   ;;  %v998_v37 = vsel %vm969_vm3, %v960_v33, 0.0  ;;  %v956_v41 = vld [vmem:[%s1909_s27 + $0x18] sm:$0xff]  ;;  %v989_v43 = vsel %vm969_vm3, %v958_v39, 0.0  ;;  %v979_v45 = vsel %vm969_vm3, %v955_v42, 0.0  ;;  %v1932_v50 = vld [vmem:[%s1909_s27 + $0x68] sm:$0xff]  ;;  %v1935_v51 = vld [vmem:[%s1909_s27 + $0x60] sm:$0xff] }
  0x25   : > { %439 = vperm.xlu0 %1644, %v418_v6   ;;  %v973_v35 = vrot.slane %v972_v32, 4  ;;  %v980_v44 = vsel %vm969_vm3, %v956_v41, 0.0  ;;  %v999_v46 = vadd.f32 %v998_v37, %v997_v38  ;;  %v990_v48 = vadd.f32 %v989_v43, %v988_v40  ;;  %v1938_v52 = vld [vmem:[%s1909_s27 + $0x58] sm:$0xff]  ;;  %v559_v53 = vld [vmem:[%s1894_s20 + $0x20] sm:$0xff]  ;;  %v560_v54 = vld [vmem:[%s1894_s20 + $0x28] sm:$0xff]  ;;  %s2124_s21 = scalar_lea.vmem [#allocation4], %s1442_s12 }
  0x26   : > { %v981_v49 = vadd.f32 %v980_v44, %v979_v45  ;;  %v573_v56 = vpack.c.bf16 %v560_v54, %v559_v53  ;;  %v963_v59 = vld [vmem:[%s1909_s27 + $0x50] sm:$0xff]  ;;  %v1025_v60 = vsel %vm969_vm3, %v1932_v50, 0.0  ;;  %v1024_v61 = vsel %vm969_vm3, %v1935_v51, 0.0  ;;  %v962_v0 = vld [vmem:[%s1909_s27 + $0x48] sm:$0xff]  ;;  %v961_v1 = vld [vmem:[%s1909_s27 + $0x40] sm:$0xff]  ;;  %s1315_s12 = sshll.u32 %s2124_s21, 4  ;;  %s2201_s12 = int_to_ptr.vmem [resolvable:$true] %s1315_s12 }
  0x27   : > { %v974_v47 = vadd.f32 %v973_v35, %v972_v32  ;;  %v1000_v55 = vrot.slane %v999_v46, 4  ;;  %v991_v58 = vrot.slane %v990_v48, 4  ;;  %v1015_v63 = vsel %vm969_vm3, %v963_v59, 0.0  ;;  %v1959_v15 = vld [vmem:[%s1909_s27 + $0x70] sm:$0xff]  ;;  %v1566_v44 = vld [vmem:[%s2261_s4 + $0x28] sm:$0xff]  ;;  %s1288_s18 = scalar_lea.sflag [#allocation5], %s2105_s29 }
  0x28   : > { %v982_v62 = vrot.slane %v981_v49, 4  ;;  %v1016_v2 = vsel %vm969_vm3, %v1938_v52, 0.0  ;;  %v1007_v3 = vsel %vm969_vm3, %v962_v0, 0.0  ;;  %v1006_v4 = vsel %vm969_vm3, %v961_v1, 0.0  ;;  %v1567_v32 = vld [vmem:[%s2261_s4 + $0x30] sm:$0xff] }
  0x29   : > { %v975_v57 = vrot.slane %v974_v47, 2  ;;  %v1001_v5 = vadd.f32 %v1000_v55, %v999_v46  ;;  %v1026_v6 = vadd.f32 %v1025_v60, %v1024_v61  ;;  %v992_v8 = vadd.f32 %v991_v58, %v990_v48  ;;  %v1565_v55 = vld [vmem:[%s2261_s4 + $0x20] sm:$0xff]  ;;  %v1564_v60 = vld [vmem:[%s2261_s4 + $0x18] sm:$0xff] }
  0x2a   : > { %v1017_v9 = vadd.f32 %v1016_v2, %v1015_v63  ;;  %v983_v10 = vadd.f32 %v982_v62, %v981_v49  ;;  %v1008_v11 = vadd.f32 %v1007_v3, %v1006_v4  ;;  %v563_v3 = vld [vmem:[%s1894_s20 + $0x40] sm:$0xff]  ;;  %v564_v4 = vld [vmem:[%s1894_s20 + $0x48] sm:$0xff] }
  0x2b   : > { %v976_v7 = vadd.f32 %v975_v57, %v974_v47  ;;  %v993_v17 = vrot.slane %v992_v8, 2 }
  0x2c   : > { %472 = vperm.xlu2 %1646, %v429_v12   ;;  %457 = vperm.xlu1 %1645, %v424_v13   ;;  %v1002_v12 = vrot.slane %v1001_v5, 2  ;;  %v1027_v13 = vrot.slane %v1026_v6, 4 }
  0x2d   : > { %454 = vperm.xlu0 %1644, %v423_v14   ;;  %v1956_v14 = vld [vmem:[%s1909_s27 + $0x78] sm:$0xff]  ;;  %v977_v16 = vrot.slane %v976_v7, 1 }
  0x2e   : > { %v1003_v24 = vadd.f32 %v1002_v12, %v1001_v5  ;;  %v1028_v25 = vadd.f32 %v1027_v13, %v1026_v6  ;;  %v575_v6 = vpack.c.bf16 %v564_v4, %v563_v3 }
  0x30   : > { %v1004_v35 = vrot.slane %v1003_v24, 1 }
  0x31   : > { %1466 = vmatmul.msk.bf16.gmra.mxu0 %vm580_vm2, %v572_v28 }
  0x32   : > { %v1005_v45 = vadd.f32 %v1004_v35, %v1003_v24  ;;  %v567_v24 = vld [vmem:[%s1894_s20 + $0x60] sm:$0xff] }
  0x34   : > { %463 = vperm.xlu2 %1646, %v426_v18   ;;  %460 = vperm.xlu1 %1645, %v425_v19   ;;  %v1018_v18 = vrot.slane %v1017_v9, 4  ;;  %v1568_v19 = vld [vmem:[%s2261_s4 + $0x38] sm:$0xff] }
  0x35   : > { %475 = vperm.xlu0 %1644, %v430_v20   ;;  %v984_v20 = vrot.slane %v983_v10, 2  ;;  %709 = vmatpush.bf16.msra.mxu1 %v1568_v19 }
  0x36   : > { %1579 = vmatpush.bf16.msra.mxu3 %v1568_v19  ;;  %v1019_v28 = vadd.f32 %v1018_v18, %v1017_v9 }
  0x37   : > { %v985_v29 = vadd.f32 %v984_v20, %v983_v10  ;;  %v565_v20 = vld [vmem:[%s1894_s20 + $0x50] sm:$0xff] }
  0x38   : > { %v1020_v40 = vrot.slane %v1019_v28, 2 }
  0x39   : > { %710 = vmatpush.bf16.msra.mxu1 %v1567_v32 }
  0x3a   : > { %1580 = vmatpush.bf16.msra.mxu3 %v1567_v32  ;;  %v1021_v48 = vadd.f32 %v1020_v40, %v1019_v28 }
  0x3c   : > { %466 = vperm.xlu2 %1646, %v427_v21   ;;  %481 = vperm.xlu1 %1645, %v432_v22   ;;  %v1009_v21 = vrot.slane %v1008_v11, 4  ;;  %v1034_v22 = vsel %vm969_vm3, %v1956_v14, 0.0 }
  0x3d   : > { %478 = vperm.xlu0 %1644, %v431_v23   ;;  %v1033_v23 = vsel %vm969_vm3, %v1959_v15, 0.0  ;;  %711 = vmatpush.bf16.msra.mxu1 %v1566_v44 }
  0x3e   : > { %v1010_v30 = vadd.f32 %v1009_v21, %v1008_v11  ;;  %1581 = vmatpush.bf16.msra.mxu3 %v1566_v44  ;;  %v1562_v11 = vld [vmem:[%s2261_s4 + $0x8] sm:$0xff]  ;;  %v566_v21 = vld [vmem:[%s1894_s20 + $0x58] sm:$0xff] }
  0x41   : > { %1467 = vmatmul.msk.bf16.gmra.mxu0 %vm580_vm2, %v573_v56  ;;  %v1045_v56 = vadd.f32 1e-05, %v1005_v45  ;;  %712 = vmatpush.bf16.msra.mxu1 %v1565_v55 }
  0x42   : > { %1582 = vmatpush.bf16.msra.mxu3 %v1565_v55  ;;  %v1576_v55 = vld [vmem:[%s2264_s7 + $0x38] sm:$0xff] }
  0x43   : > { %870 = vmatpush.bf16.msra.mxu2 %v1576_v55 }
  0x44   : > { %1057 = vperm.xlu2 %1646, %v954_v26   ;;  %1052 = vperm.xlu1 %1645, %v953_v27   ;;  %v978_v26 = vadd.f32 %v977_v16, %v976_v7  ;;  %v994_v27 = vadd.f32 %v993_v17, %v992_v8 }
  0x45   : > { %469 = vperm.xlu0 %1644, %v428_v31   ;;  %v1035_v31 = vadd.f32 %v1034_v22, %v1033_v23  ;;  %713 = vmatpush.bf16.msra.mxu1 %v1564_v60  ;;  %v576_v22 = vpack.c.bf16 %v566_v21, %v565_v20 }
  0x46   : > { %v1042_v38 = vadd.f32 1e-05, %v978_v26  ;;  %1583 = vmatpush.bf16.msra.mxu3 %v1564_v60 }
  0x47   : > { %v1036_v43 = vrot.slane %v1035_v31, 4 }
  0x48   : > { %1649 = vrcp.f32 %v1042_v38 }
  0x49   : > { %v1037_v54 = vadd.f32 %v1036_v43, %v1035_v31  ;;  %1651 = vrcp.f32 %v1045_v56  ;;  %v1575_v56 = vld [vmem:[%s2264_s7 + $0x30] sm:$0xff] }
  0x4a   : > { %871 = vmatpush.bf16.msra.mxu2 %v1575_v56 }
  0x4c   : > { %1072 = vperm.xlu2 %1646, %v957_v36   ;;  %1067 = vperm.xlu1 %1645, %v956_v41   ;;  %v1029_v36 = vrot.slane %v1028_v25, 2  ;;  %v986_v41 = vrot.slane %v985_v29, 1 }
  0x4d   : > { %1062 = vperm.xlu0 %1644, %v955_v42   ;;  %v1011_v42 = vrot.slane %v1010_v30, 2 }
  0x4e   : > { %v1030_v46 = vadd.f32 %v1029_v36, %v1028_v25  ;;  %v987_v49 = vadd.f32 %v986_v41, %v985_v29  ;;  %v568_v25 = vld [vmem:[%s1894_s20 + $0x68] sm:$0xff]  ;;  %v433_v29 = vlaneseq  ;;  %v569_v36 = vld [vmem:[%s1894_s20 + $0x70] sm:$0xff] }
  0x4f   : > { %v1012_v53 = vadd.f32 %v1011_v42, %v1010_v30 }
  0x50   : > { %v1031_v57 = vrot.slane %v1030_v46, 1  ;;  %v2006_v31 = vand.u32 127, %v433_v29 }
  0x51   : > { %v1013_v61 = vrot.slane %v1012_v53, 1 }
  0x52   : > { %v1032_v62 = vadd.f32 %v1031_v57, %v1030_v46  ;;  %v1574_v57 = vld [vmem:[%s2264_s7 + $0x28] sm:$0xff] }
  0x53   : > { %872 = vmatpush.bf16.msra.mxu2 %v1574_v57 }
  0x54   : > { %1087 = vperm.xlu2 %1646, %v960_v33   ;;  %1082 = vperm.xlu1 %1645, %v959_v34   ;;  %v561_v33 = vld [vmem:[%s1894_s20 + $0x30] sm:$0xff]  ;;  %v562_v34 = vld [vmem:[%s1894_s20 + $0x38] sm:$0xff]  ;;  %v1048_v5 = vadd.f32 1e-05, %v1032_v62 }
  0x55   : > { %1077 = vperm.xlu0 %1644, %v958_v39   ;;  %v574_v37 = vpack.c.bf16 %v562_v34, %v561_v33  ;;  %v995_v39 = vrot.slane %v994_v27, 1  ;;  %v1763_v34 = vmov 1.0|1.0   ;;  %v1571_v62 = vld [vmem:[%s2264_s7 + $0x10] sm:$0xff] }
  0x57   : > { %1468 = vmatmul.msk.bf16.gmra.mxu0 %vm580_vm2, %v574_v37  ;;  %v996_v47 = vadd.f32 %v995_v39, %v994_v27  ;;  %v577_v27 = vpack.c.bf16 %v568_v25, %v567_v24  ;;  %v570_v37 = vld [vmem:[%s1894_s20 + $0x78] sm:$0xff]  ;;  %s1317_s20 = sshll.u32 %s1314_s11, 4  ;;  %s2203_s20 = int_to_ptr.hbm [resolvable:$true] %s1317_s20 }
  0x58   : > { %v578_v38 = vpack.c.bf16 %v570_v37, %v569_v36  ;;  %s1679_s25 = sshra.s32 %s2203_s20, 4  ;;  %s1680_s25 = int_to_ptr.hbm [resolvable:$true] %s1679_s25 }
  0x59   : > { %v1044_v58 = vadd.f32 1e-05, %v996_v47  ;;  %s1681_s27 = scalar_lea.hbm %s1680_s25, 128  ;;  %p1686_p0 = scmp.lt.s32.totalorder %s1680_s25, %s2267_s10 }
  0x5a   : > { %p1682_p11 = scmp.ne.s32.totalorder %s1680_s25, %s1681_s27  ;;  %p1687_p1 = scmp.lt.s32.totalorder %s1685_s30, %s1681_s27 }
  0x5b   : > { %1653 = vrcp.f32 %v1044_v58 }
  0x5c   : > { %1102 = vperm.xlu2 %1646, %v963_v59   ;;  %1097 = vperm.xlu1 %1645, %v962_v0   ;;  %v1022_v59 = vrot.slane %v1021_v48, 1  ;;  %v1563_v0 = vld [vmem:[%s2261_s4 + $0x10] sm:$0xff]  ;;  %p1683_p12 = pnand %p1682_p11, %p1859_p5  ;;  %p1688_p2 = por %p1687_p1, %p1686_p0 }
  0x5d   : > { %1092 = vperm.xlu0 %1644, %v961_v1   ;;  %v1014_v1 = vadd.f32 %v1013_v61, %v1012_v53  ;;  %714 = vmatpush.bf16.msra.mxu1 %v1563_v0 }
  0x5e   : > { %v1023_v63 = vadd.f32 %v1022_v59, %v1021_v48  ;;  %1584 = vmatpush.bf16.msra.mxu3 %v1563_v0  ;;  %v1573_v59 = vld [vmem:[%s2264_s7 + $0x20] sm:$0xff]  ;;  %v1570_v0 = vld [vmem:[%s2264_s7 + $0x8] sm:$0xff]  ;;  %p1684_p13 = pneg %p1683_p12 }
  0x5f   : > { %v1046_v9 = vadd.f32 1e-05, %v1014_v1  ;;  %873 = vmatpush.bf16.msra.mxu2 %v1573_v59  ;;  %v1569_v1 = vld [vmem:[%s2264_s7] sm:$0xff] }
  0x60   : > { %v1047_v7 = vadd.f32 1e-05, %v1023_v63  ;;  %p1689_p3 = pnand %p1688_p2, %p1684_p13 }
  0x61   : > { %715 = vmatpush.bf16.msra.mxu1 %v1562_v11 }
  0x62   : > { %1585 = vmatpush.bf16.msra.mxu3 %v1562_v11 }
  0x64   : > { %1117 = vperm.xlu2 %1646, %v1932_v50   ;;  %1112 = vperm.xlu1 %1645, %v1935_v51   ;;  %v1043_v50 = vadd.f32 1e-05, %v987_v49  ;;  %v1038_v51 = vrot.slane %v1037_v54, 2 }
  0x65   : > { %1107 = vperm.xlu0 %1644, %v1938_v52   ;;  %v1650_v52 = vpop.eup %1649 }
  0x66   : > { %1655 = vrcp.f32 %v1043_v50  ;;  %v1039_v2 = vadd.f32 %v1038_v51, %v1037_v54  ;;  %v1652_v8 = vpop.eup %1651 }
  0x67   : > { %v1654_v12 = vpop.eup %1653  ;;  %1469 = vmatmul.msk.bf16.gmra.mxu0 %vm580_vm2, %v575_v6  ;;  %1657 = vrcp.f32 %v1048_v5 }
  0x68   : > { %v1040_v10 = vrot.slane %v1039_v2, 1  ;;  %1659 = vrcp.f32 %v1047_v7  ;;  %v2078_v7 = vld [vmem:[%s2263_s6] ss:$0 sm:$0xff] }
  0x69   : > { %1661 = vrcp.f32 %v1046_v9 }
  0x6c   : > { %1212 = vperm.xlu2 %1646, %v1650_v52   ;;  %1127 = vperm.xlu1 %1645, %v1956_v14   ;;  %v1656_v13 = vpop.eup %1655  ;;  %v1561_v14 = vld [vmem:[%s2261_s4] sm:$0xff]  ;;  %v1572_v52 = vld [vmem:[%s2264_s7 + $0x18] sm:$0xff] }
  0x6d   : > { %1122 = vperm.xlu0 %1644, %v1959_v15   ;;  %v1041_v15 = vadd.f32 %v1040_v10, %v1039_v2  ;;  %716 = vmatpush.bf16.msra.mxu1 %v1561_v14  ;;  %v1658_v16 = vpop.eup %1657 }
  0x6e   : > { %1586 = vmatpush.bf16.msra.mxu3 %v1561_v14  ;;  %v1660_v18 = vpop.eup %1659  ;;  %874 = vmatpush.bf16.msra.mxu2 %v1572_v52 }
  0x6f   : > { %v1049_v17 = vadd.f32 1e-05, %v1041_v15  ;;  %v1662_v19 = vpop.eup %1661 }
  0x71   : > { %1663 = vrcp.f32 %v1049_v17 }
  0x72   : > { %1587 = vmatpush.bf16.msrb.mxu3 %v1576_v55  ;;  %875 = vmatpush.bf16.msra.mxu2 %v1571_v62 }
  0x74   : > { %1227 = vperm.xlu2 %1646, %v1652_v8   ;;  %1222 = vperm.xlu1 %1645, %v1654_v12  }
  0x75   : > { %1217 = vperm.xlu0 %1644, %v1656_v13  }
  0x76   : > { %v449_v30 = vpop.permute.xlu2 %448  ;;  %1588 = vmatpush.bf16.msrb.mxu3 %v1575_v56  ;;  %876 = vmatpush.bf16.msra.mxu2 %v1570_v0 }
  0x77   : > { %1470 = vmatmul.msk.bf16.gmra.mxu0 %vm580_vm2, %v576_v22  ;;  %v1664_v23 = vpop.eup %1663  ;;  %vm487_vm13 = vcmp.eq.s32.totalorder %v2006_v31, %v449_v30 }
  0x7a   : > { %1589 = vmatpush.bf16.msrb.mxu3 %v1574_v57  ;;  %877 = vmatpush.bf16.msra.mxu2 %v1569_v1 }
  0x7c   : > { %1242 = vperm.xlu2 %1646, %v1658_v16   ;;  %1237 = vperm.xlu1 %1645, %v1660_v18  }
  0x7d   : > { %1232 = vperm.xlu0 %1644, %v1662_v19  }
  0x7e   : > { %v452_v35 = vpop.permute.xlu2 %451  ;;  %1590 = vmatpush.bf16.msrb.mxu3 %v1573_v59 }
  0x7f   : > { %vm488_vm14 = vcmp.eq.s32.totalorder %v2006_v31, %v452_v35 }
  0x80   : > { %vm1509_vm1 = vmpackc.low %vm488_vm14, %vm487_vm13 }
  0x82   : > { %1591 = vmatpush.bf16.msrb.mxu3 %v1572_v52 }
  0x85   : > { %1247 = vperm.xlu0 %1644, %v1664_v23  }
  0x86   : > { %v473_v41 = vpop.permute.xlu2 %472  ;;  %1592 = vmatpush.bf16.msrb.mxu3 %v1571_v62 }
  0x87   : > { %1471 = vmatmul.msk.bf16.gmra.mxu0 %vm580_vm2, %v577_v27  ;;  %vm495_vm9 = vcmp.eq.s32.totalorder %v2006_v31, %v473_v41 }
  0x8a   : > { %1593 = vmatpush.bf16.msrb.mxu3 %v1570_v0 }
  0x8e   : > { %v443_v26 = vpop.permute.xlu1 %442  ;;  %v464_v53 = vpop.permute.xlu2 %463  ;;  %1594 = vmatpush.bf16.msrb.mxu3 %v1569_v1 }
  0x8f   : > { %v437_v28 = vpop.permute.xlu0 %436  ;;  %vm485_vm7 = vcmp.eq.s32.totalorder %v2006_v31, %v443_v26 }
  0x90   : > { %vm483_vm4 = vcmp.eq.s32.totalorder %v2006_v31, %v437_v28 }
  0x96   : > { %v446_v32 = vpop.permute.xlu1 %445  ;;  %v467_v50 = vpop.permute.xlu2 %466 }
  0x97   : > { %v440_v33 = vpop.permute.xlu0 %439  ;;  %1472 = vmatmul.msk.bf16.gmra.mxu0 %vm580_vm2, %v578_v38  ;;  %vm486_vm8 = vcmp.eq.s32.totalorder %v2006_v31, %v446_v32 }
  0x98   : > { %vm484_vm5 = vcmp.eq.s32.totalorder %v2006_v31, %v440_v33  ;;  %vm1507_vm10 = vmpackc.low %vm486_vm8, %vm485_vm7 }
  0x99   : > { %vm1505_vm6 = vmpackc.low %vm484_vm5, %vm483_vm4 }
  0x9a   : > { %1506 = vmatmul.msk.bf16.vlgmr.msra.gmra.mxu1 %vm1505_vm6, %v1763_v34  ;;  %vm492_vm6 = vcmp.eq.s32.totalorder %v2006_v31, %v464_v53 }
  0x9e   : > { %v458_v39 = vpop.permute.xlu1 %457  ;;  %v621_v44 = vpop.f32.mrf.mxu0 }
  0x9f   : > { %v455_v40 = vpop.permute.xlu0 %454  ;;  %vm490_vm3 = vcmp.eq.s32.totalorder %v2006_v31, %v458_v39 }
  0xa0   : > { %vm489_vm4 = vcmp.eq.s32.totalorder %v2006_v31, %v455_v40 }
  0xa1   : > { %vm1511_vm5 = vmpackc.low %vm490_vm3, %vm489_vm4 }
  0xa6   : > { %v461_v43 = vpop.permute.xlu1 %460  ;;  %v623_v47 = vpop.f32.mrf.mxu0 }
  0xa7   : > { %v476_v42 = vpop.permute.xlu0 %475  ;;  %vm491_vm7 = vcmp.eq.s32.totalorder %v2006_v31, %v461_v43 }
  0xa8   : > { %vm496_vm11 = vcmp.eq.s32.totalorder %v2006_v31, %v476_v42  ;;  %vm1513_vm8 = vmpackc.low %vm492_vm6, %vm491_vm7 }
  0xa9   : > { %vm1517_vm12 = vmpackc.low %vm496_vm11, %vm495_vm9 }
  0xaa   : > { %1508 = vmatmul.msk.bf16.gmra.mxu1 %vm1507_vm10, %v1763_v34  ;;  %1518 = vmatmul.msk.bf16.vlgmr.msra.gmra.mxu3 %vm1517_vm12, %v1763_v34  ;;  %vm493_vm10 = vcmp.eq.s32.totalorder %v2006_v31, %v467_v50  ;;  %vm1266_vm12 = vcmask 1041409  }
  0xae   : > { %v482_v45 = vpop.permute.xlu1 %481  ;;  %v626_v48 = vpop.f32.mrf.mxu0 }
  0xaf   : > { %v479_v46 = vpop.permute.xlu0 %478  ;;  %vm498_vm15 = vcmp.eq.s32.totalorder %v2006_v31, %v482_v45 }
  0xb0   : > { %vm497_vm0 = vcmp.eq.s32.totalorder %v2006_v31, %v479_v46 }
  0xb1   : > { %vm1519_vm2 = vmpackc.low %vm498_vm15, %vm497_vm0 }
  0xb6   : > { %v628_v49 = vpop.f32.mrf.mxu0 }
  0xb7   : > { %v470_v60 = vpop.permute.xlu0 %469 }
  0xb8   : > { %vm494_vm9 = vcmp.eq.s32.totalorder %v2006_v31, %v470_v60 }
  0xb9   : > { %vm1515_vm11 = vmpackc.low %vm494_vm9, %vm493_vm10 }
  0xba   : > { %1510 = vmatmul.msk.bf16.gmra.mxu1 %vm1509_vm1, %v1763_v34  ;;  %1520 = vmatmul.msk.bf16.gmra.mxu3 %vm1519_vm2, %v1763_v34 }
  0xbe   : > { %v2029_v54 = vpop.f32.mrf.mxu0 }
  0xc6   : > { %v2043_v58 = vpop.f32.mrf.mxu0 }
  0xca   : > { %1512 = vmatmul.msk.bf16.gmra.mxu1 %vm1511_vm5, %v1763_v34 }
  0xd4   : > { %v2050_v61 = vpop.f32.mrf.mxu0 }
  0xda   : > { %1514 = vmatmul.msk.bf16.gmra.mxu1 %vm1513_vm8, %v1763_v34 }
  0xdc   : > { %v2053_v51 = vpop.f32.mrf.mxu0 }
  0xe4   : > { %v2061_v63 = vpop.f32.mrf.mxu0 }
  0xea   : > { %1516 = vmatmul.msk.bf16.gmra.mxu1 %vm1515_vm11, %v1763_v34 }
  0xec   : > { %v2069_v2 = vpop.f32.mrf.mxu0 }
  0xf4   : > { %v2071_v3 = vpop.f32.mrf.mxu0 }
  0xfc   : > { %v2073_v5 = vpop.f32.mrf.mxu0 }
 0x104   : > { %v651_v14 = vpop.f32.mrf.mxu0 }
 0x10c   : > { %v653_v20 = vpop.f32.mrf.mxu0 }
 0x114   : > { %v656_v33 = vpop.f32.mrf.mxu0 }
 0x117   : > { %v718_v4 = vpop.f32.mrf.mxu1 }
 0x118   : > { %v719_v6 = vadd.f32 %v718_v4, %v621_v44 }
 0x11a   : > { %v762_v9 = vadd.f32 %v2078_v7, %v719_v6 }
 0x11c   : > { %v778_v12 = vmax.f32 %v762_v9, 0.0  ;;  %v658_v44 = vpop.f32.mrf.mxu0 }
 0x11f   : > { %v720_v8 = vpop.f32.mrf.mxu1 }
 0x120   : > { %v721_v10 = vadd.f32 %v720_v8, %v623_v47 }
 0x122   : > { %v763_v11 = vadd.f32 %v2078_v7, %v721_v10 }
 0x124   : > { %v779_v13 = vmax.f32 %v763_v11, 0.0 }
 0x126   : > { %v794_v15 = vpack.c.bf16 %v779_v13, %v778_v12 }
 0x127   : > { %v723_v16 = vpop.f32.mrf.mxu1 }
 0x128   : > { %878 = vmatmul.bf16.vlgmr.msra.gmra.mxu2 %v794_v15  ;;  %v724_v17 = vadd.f32 %v723_v16, %v626_v48 }
 0x12a   : > { %v764_v21 = vadd.f32 %v2078_v7, %v724_v17 }
 0x12c   : > { %v780_v25 = vmax.f32 %v764_v21, 0.0  ;;  %v1058_v21 = vpop.permute.xlu2 %1057 }
 0x12d   : > { %v748_v18 = vpop.f32.mrf.mxu3 }
 0x12e   : > { %v749_v23 = vadd.f32 %v748_v18, %v651_v14 }
 0x12f   : > { %v725_v19 = vpop.f32.mrf.mxu1 }
 0x130   : > { %v726_v22 = vadd.f32 %v725_v19, %v628_v49  ;;  %v774_v28 = vadd.f32 %v2078_v7, %v749_v23 }
 0x132   : > { %v765_v24 = vadd.f32 %v2078_v7, %v726_v22  ;;  %v790_v34 = vmax.f32 %v774_v28, 0.0  ;;  %v1063_v22 = vpop.permute.xlu0 %1062  ;;  %v2130_v28 = vld [vmem:[%s2260_s3 + $0x8] sm:$0xff] }
 0x134   : > { %v781_v26 = vmax.f32 %v765_v24, 0.0  ;;  %v2119_v24 = vpop.permute.xlu2 %1072 }
 0x135   : > { %v750_v27 = vpop.f32.mrf.mxu3 }
 0x136   : > { %v751_v29 = vadd.f32 %v750_v27, %v653_v20  ;;  %v795_v30 = vpack.c.bf16 %v781_v26, %v780_v25 }
 0x137   : > { %v728_v31 = vpop.f32.mrf.mxu1 }
 0x138   : > { %v775_v32 = vadd.f32 %v2078_v7, %v751_v29  ;;  %883 = vmatmul.bf16.gmra.mxu2 %v795_v30  ;;  %v729_v36 = vadd.f32 %v728_v31, %v2029_v54  ;;  %v1053_v31 = vpop.permute.xlu1 %1052 }
 0x13a   : > { %v791_v35 = vmax.f32 %v775_v32, 0.0  ;;  %v766_v40 = vadd.f32 %v2078_v7, %v729_v36  ;;  %v2122_v26 = vpop.permute.xlu0 %1077 }
 0x13c   : > { %v800_v37 = vpack.c.bf16 %v791_v35, %v790_v34  ;;  %v782_v45 = vmax.f32 %v766_v40, 0.0  ;;  %v2134_v32 = vpop.permute.xlu2 %1087 }
 0x13d   : > { %v753_v38 = vpop.f32.mrf.mxu3 }
 0x13e   : > { %908 = vmatmul.bf16.vlgmr.msrb.gmra.mxu3 %v800_v37  ;;  %v754_v42 = vadd.f32 %v753_v38, %v656_v33 }
 0x13f   : > { %v730_v39 = vpop.f32.mrf.mxu1 }
 0x140   : > { %v731_v41 = vadd.f32 %v730_v39, %v2043_v58  ;;  %v776_v48 = vadd.f32 %v2078_v7, %v754_v42 }
 0x142   : > { %v767_v43 = vadd.f32 %v2078_v7, %v731_v41  ;;  %v792_v56 = vmax.f32 %v776_v48, 0.0  ;;  %v2137_v35 = vpop.permute.xlu0 %1092 }
 0x144   : > { %v783_v46 = vmax.f32 %v767_v43, 0.0  ;;  %v2142_v42 = vpop.permute.xlu2 %1102 }
 0x145   : > { %v755_v47 = vpop.f32.mrf.mxu3 }
 0x146   : > { %v756_v49 = vadd.f32 %v755_v47, %v658_v44  ;;  %v796_v53 = vpack.c.bf16 %v783_v46, %v782_v45 }
 0x147   : > { %v733_v54 = vpop.f32.mrf.mxu1 }
 0x148   : > { %v777_v55 = vadd.f32 %v2078_v7, %v756_v49  ;;  %888 = vmatmul.bf16.gmra.mxu2 %v796_v53  ;;  %v734_v59 = vadd.f32 %v733_v54, %v2050_v61  ;;  %v1068_v53 = vpop.permute.xlu1 %1067 }
 0x14a   : > { %v793_v57 = vmax.f32 %v777_v55, 0.0  ;;  %v768_v50 = vadd.f32 %v2078_v7, %v734_v59  ;;  %v2145_v44 = vpop.permute.xlu0 %1107 }
 0x14c   : > { %v801_v58 = vpack.c.bf16 %v793_v57, %v792_v56  ;;  %v784_v0 = vmax.f32 %v768_v50, 0.0 }
 0x14e   : > { %913 = vmatmul.bf16.gmra.mxu3 %v801_v58 }
 0x14f   : > { %v735_v60 = vpop.f32.mrf.mxu1 }
 0x150   : > { %v736_v52 = vadd.f32 %v735_v60, %v2053_v51 }
 0x152   : > { %v769_v62 = vadd.f32 %v2078_v7, %v736_v52 }
 0x154   : > { %v785_v1 = vmax.f32 %v769_v62, 0.0 }
 0x156   : > { %v797_v4 = vpack.c.bf16 %v785_v1, %v784_v0  ;;  %v1118_v1 = vpop.permute.xlu2 %1117 }
 0x157   : > { %v738_v6 = vpop.f32.mrf.mxu1 }
 0x158   : > { %893 = vmatmul.bf16.gmra.mxu2 %v797_v4  ;;  %v739_v8 = vadd.f32 %v738_v6, %v2061_v63  ;;  %v2158_v4 = vpop.permute.xlu0 %1122 }
 0x15a   : > { %v770_v10 = vadd.f32 %v2078_v7, %v739_v8 }
 0x15c   : > { %v786_v12 = vmax.f32 %v770_v10, 0.0 }
 0x15f   : > { %v740_v9 = vpop.f32.mrf.mxu1 }
 0x160   : > { %v741_v61 = vadd.f32 %v740_v9, %v2069_v2 }
 0x162   : > { %v771_v11 = vadd.f32 %v2078_v7, %v741_v61 }
 0x164   : > { %v787_v13 = vmax.f32 %v771_v11, 0.0 }
 0x166   : > { %v798_v51 = vpack.c.bf16 %v787_v13, %v786_v12 }
 0x167   : > { %v743_v14 = vpop.f32.mrf.mxu1 }
 0x168   : > { %898 = vmatmul.bf16.gmra.mxu2 %v798_v51  ;;  %v744_v15 = vadd.f32 %v743_v14, %v2071_v3  ;;  %v2110_v3 = vld [vmem:[%s2265_s8] ss:$0 sm:$0xff] }
 0x16a   : > { %v772_v17 = vadd.f32 %v2078_v7, %v744_v15 }
 0x16c   : > { %v788_v19 = vmax.f32 %v772_v17, 0.0 }
 0x16f   : > { %v745_v16 = vpop.f32.mrf.mxu1 }
 0x170   : > { %v746_v63 = vadd.f32 %v745_v16, %v2073_v5  ;;  %v2116_v5 = vld [vmem:[%s2260_s3] sm:$0xff] }
 0x172   : > { %v773_v18 = vadd.f32 %v2078_v7, %v746_v63 }
 0x174   : > { %v789_v20 = vmax.f32 %v773_v18, 0.0  ;;  %v1213_v18 = vpop.permute.xlu2 %1212 }
 0x176   : > { %v799_v2 = vpack.c.bf16 %v789_v20, %v788_v19  ;;  %v1218_v19 = vpop.permute.xlu0 %1217 }
 0x178   : > { %903 = vmatmul.bf16.gmra.mxu2 %v799_v2 }
 0x1ab   : > { %v879_v23 = vpop.f32.mrf.mxu2 }
 0x1ac   : > { %v880_v7 = vadd.f32 %v2110_v3, %v879_v23 }
 0x1ae   : > { %v921_v25 = vadd.f32 %v2116_v5, %v880_v7  ;;  %v1083_v7 = vpop.permute.xlu1 %1082 }
 0x1b0   : > { %937 = vst [vmem:[%s2124_s21] sm:$0xff] %v921_v25  ;;  %v1130_v33 = vmul.f32 %v1053_v31, %v921_v25 }
 0x1b3   : > { %v881_v27 = vpop.f32.mrf.mxu2 }
 0x1b4   : > { %v882_v29 = vadd.f32 %v2110_v3, %v881_v27 }
 0x1b6   : > { %v922_v30 = vadd.f32 %v2130_v28, %v882_v29 }
 0x1b8   : > { %938 = vst [vmem:[%s2124_s21 + $0x8] sm:$0xff] %v922_v30  ;;  %v1131_v34 = vmul.f32 %v1058_v21, %v922_v30 }
 0x1ba   : > { %v1146_v36 = vadd.f32 %v1131_v34, %v1130_v33  ;;  %v1098_v34 = vpop.permute.xlu1 %1097 }
 0x1bb   : > { %v884_v37 = vpop.f32.mrf.mxu2 }
 0x1bc   : > { %v885_v38 = vadd.f32 %v2110_v3, %v884_v37  ;;  %v1147_v40 = vrot.slane %v1146_v36, 4 }
 0x1be   : > { %v923_v39 = vadd.f32 %v2116_v5, %v885_v38  ;;  %v1148_v46 = vadd.f32 %v1147_v40, %v1146_v36 }
 0x1c0   : > { %939 = vst [vmem:[%s2124_s21 + $0x10] sm:$0xff] %v923_v39  ;;  %v1149_v54 = vrot.slane %v1148_v46, 2  ;;  %v1132_v55 = vmul.f32 %v1063_v22, %v923_v39 }
 0x1c1   : > { %v909_v41 = vpop.f32.mrf.mxu3 }
 0x1c2   : > { %v910_v43 = vadd.f32 %v2110_v3, %v909_v41  ;;  %v1150_v50 = vadd.f32 %v1149_v54, %v1148_v46  ;;  %v1113_v40 = vpop.permute.xlu1 %1112 }
 0x1c3   : > { %v886_v45 = vpop.f32.mrf.mxu2 }
 0x1c4   : > { %v2148_v47 = vadd.f32 %v2116_v5, %v910_v43  ;;  %v887_v48 = vadd.f32 %v2110_v3, %v886_v45  ;;  %v1151_v9 = vrot.slane %v1150_v50, 1 }
 0x1c6   : > { %949 = vst [vmem:[%s2124_s21 + $0x60] sm:$0xff] %v2148_v47  ;;  %v924_v49 = vadd.f32 %v2130_v28, %v887_v48  ;;  %v1152_v51 = vadd.f32 %v1151_v9, %v1150_v50 }
 0x1c8   : > { %940 = vst [vmem:[%s2124_s21 + $0x18] sm:$0xff] %v924_v49  ;;  %v1133_v56 = vmul.f32 %v1068_v53, %v924_v49  ;;  %v1250_v20 = vmul.f32 %v1213_v18, %v1152_v51 }
 0x1c9   : > { %v911_v57 = vpop.f32.mrf.mxu3 }
 0x1ca   : > { %v1153_v59 = vadd.f32 %v1133_v56, %v1132_v55  ;;  %v912_v58 = vadd.f32 %v2110_v3, %v911_v57 }
 0x1cb   : > { %v889_v60 = vpop.f32.mrf.mxu2 }
 0x1cc   : > { %v1154_v52 = vrot.slane %v1153_v59, 4  ;;  %v934_v62 = vadd.f32 %v2130_v28, %v912_v58  ;;  %v890_v0 = vadd.f32 %v2110_v3, %v889_v60 }
 0x1ce   : > { %v1155_v6 = vadd.f32 %v1154_v52, %v1153_v59  ;;  %950 = vst [vmem:[%s2124_s21 + $0x68] sm:$0xff] %v934_v62  ;;  %v925_v8 = vadd.f32 %v2116_v5, %v890_v0  ;;  %v1128_v59 = vpop.permute.xlu1 %1127  ;;  %v1143_v58 = vmul.f32 %v1118_v1, %v934_v62 }
 0x1d0   : > { %v1156_v10 = vrot.slane %v1155_v6, 2  ;;  %941 = vst [vmem:[%s2124_s21 + $0x20] sm:$0xff] %v925_v8  ;;  %v1134_v48 = vmul.f32 %v2119_v24, %v925_v8 }
 0x1d1   : > { %v914_v61 = vpop.f32.mrf.mxu3 }
 0x1d2   : > { %v1157_v11 = vadd.f32 %v1156_v10, %v1155_v6  ;;  %v915_v12 = vadd.f32 %v2110_v3, %v914_v61 }
 0x1d3   : > { %v891_v13 = vpop.f32.mrf.mxu2 }
 0x1d4   : > { %v1158_v14 = vrot.slane %v1157_v11, 1  ;;  %v935_v15 = vadd.f32 %v2116_v5, %v915_v12  ;;  %v892_v16 = vadd.f32 %v2110_v3, %v891_v13 }
 0x1d6   : > { %v1159_v17 = vadd.f32 %v1158_v14, %v1157_v11  ;;  %951 = vst [vmem:[%s2124_s21 + $0x70] sm:$0xff] %v935_v15  ;;  %v926_v63 = vadd.f32 %v2130_v28, %v892_v16  ;;  %v1144_v24 = vmul.f32 %v2158_v4, %v935_v15 }
 0x1d8   : > { %v1251_v2 = vmul.f32 %v1218_v19, %v1159_v17  ;;  %942 = vst [vmem:[%s2124_s21 + $0x28] sm:$0xff] %v926_v63  ;;  %v1135_v41 = vmul.f32 %v2122_v26, %v926_v63 }
 0x1d9   : > { %v916_v21 = vpop.f32.mrf.mxu3 }
 0x1da   : > { %v917_v22 = vadd.f32 %v2110_v3, %v916_v21  ;;  %v2170_v23 = vsel %vm1266_vm12, %v1251_v2, %v1250_v20  ;;  %v1160_v54 = vadd.f32 %v1135_v41, %v1134_v48 }
 0x1db   : > { %v894_v25 = vpop.f32.mrf.mxu2 }
 0x1dc   : > { %v936_v27 = vadd.f32 %v2130_v28, %v917_v22  ;;  %v895_v29 = vadd.f32 %v2110_v3, %v894_v25  ;;  %v1161_v50 = vrot.slane %v1160_v54, 4 }
 0x1de   : > { %952 = vst [vmem:[%s2124_s21 + $0x78] sm:$0xff] %v936_v27  ;;  %v927_v30 = vadd.f32 %v2116_v5, %v895_v29  ;;  %v1145_v26 = vmul.f32 %v1128_v59, %v936_v27  ;;  %v1162_v62 = vadd.f32 %v1161_v50, %v1160_v54 }
 0x1e0   : > { %943 = vst [vmem:[%s2124_s21 + $0x30] sm:$0xff] %v927_v30  ;;  %v1136_v49 = vmul.f32 %v1083_v7, %v927_v30  ;;  %v1195_v9 = vadd.f32 %v1145_v26, %v1144_v24  ;;  %v1163_v4 = vrot.slane %v1162_v62, 2 }
 0x1e2   : > { %v1196_v11 = vrot.slane %v1195_v9, 4  ;;  %v1164_v17 = vadd.f32 %v1163_v4, %v1162_v62 }
 0x1e3   : > { %v896_v31 = vpop.f32.mrf.mxu2 }
 0x1e4   : > { %v897_v33 = vadd.f32 %v2110_v3, %v896_v31  ;;  %v1197_v15 = vadd.f32 %v1196_v11, %v1195_v9 }
 0x1e6   : > { %v928_v36 = vadd.f32 %v2130_v28, %v897_v33 }
 0x1e8   : > { %944 = vst [vmem:[%s2124_s21 + $0x38] sm:$0xff] %v928_v36  ;;  %v1137_v45 = vmul.f32 %v2134_v32, %v928_v36  ;;  %v1142_v32 = vmul.f32 %v1113_v40, %v2148_v47 }
 0x1ea   : > { %v1167_v55 = vadd.f32 %v1137_v45, %v1136_v49  ;;  %v1188_v8 = vadd.f32 %v1143_v58, %v1142_v32 }
 0x1eb   : > { %v899_v37 = vpop.f32.mrf.mxu2 }
 0x1ec   : > { %v900_v38 = vadd.f32 %v2110_v3, %v899_v37  ;;  %v1168_v0 = vrot.slane %v1167_v55, 4  ;;  %v1189_v1 = vrot.slane %v1188_v8, 4 }
 0x1ee   : > { %v929_v39 = vadd.f32 %v2116_v5, %v900_v38  ;;  %v1169_v47 = vadd.f32 %v1168_v0, %v1167_v55 }
 0x1f0   : > { %945 = vst [vmem:[%s2124_s21 + $0x40] sm:$0xff] %v929_v39  ;;  %v1138_v56 = vmul.f32 %v2137_v35, %v929_v39  ;;  %v1170_v13 = vrot.slane %v1169_v47, 2 }
 0x1f2   : > { %v1171_v63 = vadd.f32 %v1170_v13, %v1169_v47 }
 0x1f3   : > { %v901_v43 = vpop.f32.mrf.mxu2 }
 0x1f4   : > { %v902_v46 = vadd.f32 %v2110_v3, %v901_v43 }
 0x1f6   : > { %v930_v53 = vadd.f32 %v2130_v28, %v902_v46 }
 0x1f8   : > { %946 = vst [vmem:[%s2124_s21 + $0x48] sm:$0xff] %v930_v53  ;;  %v1139_v57 = vmul.f32 %v1098_v34, %v930_v53 }
 0x1fa   : > { %v1174_v60 = vadd.f32 %v1139_v57, %v1138_v56 }
 0x1fb   : > { %v904_v52 = vpop.f32.mrf.mxu2 }
 0x1fc   : > { %v905_v6 = vadd.f32 %v2110_v3, %v904_v52  ;;  %v1175_v35 = vrot.slane %v1174_v60, 4 }
 0x1fe   : > { %v931_v10 = vadd.f32 %v2116_v5, %v905_v6  ;;  %v1176_v61 = vadd.f32 %v1175_v35, %v1174_v60  ;;  %v1190_v5 = vadd.f32 %v1189_v1, %v1188_v8 }
 0x200   : > { %947 = vst [vmem:[%s2124_s21 + $0x50] sm:$0xff] %v931_v10  ;;  %v1177_v14 = vrot.slane %v1176_v61, 2  ;;  %v1140_v18 = vmul.f32 %v2142_v42, %v931_v10  ;;  %v1191_v20 = vrot.slane %v1190_v5, 2 }
 0x203   : > { %v906_v12 = vpop.f32.mrf.mxu2 }
 0x204   : > { %v907_v51 = vadd.f32 %v2110_v3, %v906_v12  ;;  %v1178_v3 = vadd.f32 %v1177_v14, %v1176_v61 }
 0x206   : > { %v932_v16 = vadd.f32 %v2130_v28, %v907_v51 }
 0x208   : > { %948 = vst [vmem:[%s2124_s21 + $0x58] sm:$0xff] %v932_v16  ;;  %v1141_v19 = vmul.f32 %v2145_v44, %v932_v16 }
 0x209   : > { %1692 = shalt.err (!%p1689_p3)
}
 0x20a   : > { %s1764_s21 = smov 128   ;;  %s1765_s1 = smov 8   ;;  %v1198_v28 = vrot.slane %v1197_v15, 2  ;;  %v1181_v42 = vadd.f32 %v1141_v19, %v1140_v18  ;;  %v1165_v44 = vrot.slane %v1164_v17, 1  ;;  %v1172_v2 = vrot.slane %v1171_v63, 1  ;;  %v1223_v22 = vpop.permute.xlu1 %1222  ;;  %v1228_v27 = vpop.permute.xlu2 %1227 }
 0x20b   : > { %1596 = dma.vmem_to_hbm [thread:$0]  (%p1859_p5), %s2201_s12, 2048, %s2203_s20, %s1288_s18, %s1764_s21, %s1764_s21, %s1765_s1   ;;  %v1192_v7 = vadd.f32 %v1191_v20, %v1190_v5  ;;  %v1179_v25 = vrot.slane %v1178_v3, 1  ;;  %v1233_v31 = vpop.permute.xlu0 %1232  ;;  %vm1268_vm13 = vcmask 1042434   ;;  %vm1270_vm14 = vcmask 1043459  }
 0x20c   : > { %v1182_v21 = vrot.slane %v1181_v42, 4  ;;  %v1199_v29 = vadd.f32 %v1198_v28, %v1197_v15  ;;  %v1166_v33 = vadd.f32 %v1165_v44, %v1164_v17  ;;  %v1173_v34 = vadd.f32 %v1172_v2, %v1171_v63  ;;  %s1441_s0 = sshll.u32 %s2105_s29, 3  ;;  %s1555_s1 = sshll.u32 %s1842_s17, 3 }
 0x20d   : > { %v1193_v37 = vrot.slane %v1192_v7, 1  ;;  %v1180_v38 = vadd.f32 %v1179_v25, %v1178_v3  ;;  %s1298_s18 = scalar_lea.hbm %s2266_s9, %s1555_s1  ;;  %vm1272_vm15 = vcmask 1044484   ;;  %vm1274_vm0 = vcmask 1045509   ;;  %s389_s17 = scalar_lea.vmem [#allocation2], %s1441_s0 }
 0x20e   : > { %v1183_v30 = vadd.f32 %v1182_v21, %v1181_v42  ;;  %v1200_v39 = vrot.slane %v1199_v29, 1  ;;  %v1252_v41 = vmul.f32 %v1223_v22, %v1166_v33  ;;  %v1253_v43 = vmul.f32 %v1228_v27, %v1173_v34  ;;  %s1300_s25 = sshll.u32 %s389_s17, 4  ;;  %s1302_s27 = sshll.u32 %s1298_s18, 4  ;;  %s1301_s25 = int_to_ptr.vmem [resolvable:$true] %s1300_s25  ;;  %s1303_s27 = int_to_ptr.hbm [resolvable:$true] %s1302_s27 }
 0x20f   : > { %v1194_v46 = vadd.f32 %v1193_v37, %v1192_v7  ;;  %v1254_v48 = vmul.f32 %v1233_v31, %v1180_v38  ;;  %vm1276_vm1 = vcmask 1046534   ;;  %vm1278_vm2 = vcmask 1047559   ;;  %s1283_s26 = scalar_lea.sflag [#allocation3], %s2105_s29  ;;  %s1707_s28 = sshra.s32 %s1303_s27, 4  ;;  %s1708_s28 = int_to_ptr.hbm [resolvable:$true] %s1707_s28 }
 0x210   : > { %v1184_v36 = vrot.slane %v1183_v30, 2  ;;  %v1201_v53 = vadd.f32 %v1200_v39, %v1199_v29  ;;  %v1269_v55 = vsel %vm1268_vm13, %v1252_v41, %v2170_v23  ;;  %s1709_s30 = scalar_lea.hbm %s1708_s28, 8  ;;  %s1713_s0 = scalar_lea.hbm %s2266_s9, 16 }
 0x211   : > { %v1271_v59 = vsel %vm1270_vm14, %v1253_v43, %v1269_v55  ;;  %p1710_p4 = scmp.ne.s32.totalorder %s1708_s28, %s1709_s30  ;;  %p1714_p9 = scmp.lt.s32.totalorder %s1708_s28, %s2266_s9 }
 0x212   : > { %v1185_v40 = vadd.f32 %v1184_v36, %v1183_v30  ;;  %v1238_v54 = vpop.permute.xlu1 %1237  ;;  %v1243_v56 = vpop.permute.xlu2 %1242  ;;  %v1273_v60 = vsel %vm1272_vm15, %v1254_v48, %v1271_v59  ;;  %p1715_p10 = scmp.lt.s32.totalorder %s1713_s0, %s1709_s30 }
 0x213   : > { %v1248_v58 = vpop.permute.xlu0 %1247  ;;  %v1256_v26 = vmul.f32 %v1243_v56, %v1194_v46  ;;  %p1711_p7 = pnand %p1710_p4, %p1859_p5 }
 0x214   : > { %v1186_v45 = vrot.slane %v1185_v40, 1  ;;  %v1257_v32 = vmul.f32 %v1248_v58, %v1201_v53  ;;  %p1716_p11 = por %p1715_p10, %p1714_p9 }
 0x215   : > { %p1712_p8 = pneg %p1711_p7 }
 0x216   : > { %v1187_v49 = vadd.f32 %v1186_v45, %v1185_v40 }
 0x217   : > { %p1717_p12 = pnand %p1716_p11, %p1712_p8 }
 0x218   : > { %v1255_v57 = vmul.f32 %v1238_v54, %v1187_v49 }
 0x21a   : > { %v1275_v50 = vsel %vm1274_vm0, %v1255_v57, %v1273_v60 }
 0x21b   : > { %v1277_v52 = vsel %vm1276_vm1, %v1256_v26, %v1275_v50 }
 0x21c   : > { %v1279_v23 = vsel %vm1278_vm2, %v1257_v32, %v1277_v52 }
 0x21d   : > { %1281 = vst [vmem:[%s389_s17] sm:$0xff] %v1279_v23 }
 0x21e   : > { %1720 = shalt.err (!%p1717_p12)
}
 0x21f   : > { %1595 = dma.vmem_to_hbm [thread:$0]  (%p1859_p5), %s1301_s25, 128, %s1303_s27, %s1283_s26  }
 0x220 PF: > { %p1606_p13 = scmp.ge.s32.totalorder %s1759_s16, 2  ;;  %s1332_s29 = sand.u32 1, %s1747_s13  }
 0x221   : > { %s1333_s20 = scalar_lea.sflag [#allocation3], %s1332_s29 }
 0x222   : > { %p1600_p0 = pnand %p1606_p13, %p1863_p6 }
 0x224   : > { %p1601_p1 = pneg %p1600_p0 }
 0x226   : > { %1738 = dma.done.wait (%p1601_p1), %s1333_s20, 128  }
 0x227   : > { %1740 = vsyncadd (%p1601_p1), %s1333_s20, 4294967168  ;;  %s1343_s18 = scalar_lea.sflag [#allocation5], %s1332_s29 }
 0x228   : > { %1742 = dma.done.wait (%p1601_p1), %s1343_s18, 2048  }
 0x229   : > { %1744 = vsyncadd (%p1601_p1), %s1343_s18, 4294965248  ;;  %p24_p5 = scmp.ge.s32.totalorder %s1846_s19, 4   ;;  %s2274_s13 = smov %s1751_s14 }
 0x22a   : > { %s2275_s14 = smov %s1755_s15  ;;  %s2276_s15 = smov %s1857_s22 }
 0x22b   : > { %s2277_s16 = smov %s1846_s19  ;;  %26 = sbr.rel (!%p24_p5) target bundleno = 8 (0x8), region = 114 }
 0x230   :  { %1349 = vsyncpa [#allocation3], 1 }
 0x231   :  { %1351 = vsyncpa [#allocation3 + $0x1], 1 }
 0x232   :  { %1352 = vsyncpa [#allocation5], 1 }
 0x233   :  { %1354 = vsyncpa [#allocation5 + $0x1], 1 }

</bundles_post_ra>
